<compile_context>
chip_gen: v6e
topology: v6e:2x2x1
jax: 0.10.0
libtpu: 0.0.40
codegen_flags: <defaults>
</compile_context>

<pallas_src>
import math

import jax
import jax.numpy as jnp
from jax import lax
from jax.experimental import pallas as pl
from jax.experimental.pallas import tpu as pltpu


def _for_each(n, body, unroll=8):
    """Run body(s) for s in [0, n): Python-unrolled when short, else fori_loop."""
    if n <= 32:
        for s in range(n):
            body(s)
    else:
        def wrapped(s, carry):
            body(s)
            return carry
        lax.fori_loop(0, n, wrapped, 0, unroll=unroll)


# --------------------------------------------------------------------------- #
# Fast path: VMEM-resident tables, one-hot gather on the MXU
# --------------------------------------------------------------------------- #
def _make_resident_kernel(num_tokens, tile_s, seg_vocab, has_weights):
    """Ref order: [w, bias]?, seg_ids, tok_ids x n, pe, seg_table, tok_tables x n, out."""

    def kernel(*refs):
        p = 0
        if has_weights:
            w_ref, bias_ref = refs[0], refs[1]
            p = 2
        seg_ids_ref = refs[p]; p += 1
        tok_ids_refs = refs[p:p + num_tokens]; p += num_tokens
        pe_ref = refs[p]; p += 1
        seg_tab_ref = refs[p]; p += 1
        tok_tab_refs = refs[p:p + num_tokens]; p += num_tokens
        out_ref = refs[p]

        f32 = jnp.float32
        d_model = pe_ref.shape[1]

        acc = pe_ref[...].astype(f32)                        # (tile_s, D)
        if has_weights:
            acc = acc * w_ref[0]

        # Segment embedding (vocab == 3): pure-VPU select, init from row 0.
        seg_ids = seg_ids_ref[...]                           # (tile_s, 1) int32
        seg_rows = [seg_tab_ref[k, :].astype(f32) for k in range(seg_vocab)]
        seg = jnp.broadcast_to(seg_rows[0], (tile_s, d_model))
        for k in range(1, seg_vocab):
            seg = jnp.where(seg_ids == k, seg_rows[k], seg)
        acc = acc + (seg * w_ref[1] if has_weights else seg)

        # Token embeddings: one-hot (tile_s, V) x (V, D) matmul on the MXU.
        # Ids are trusted to be in [0, V); padding_idx=0 rows are zero already.
        for i in range(num_tokens):
            ids = tok_ids_refs[i][...]                       # (tile_s, 1) int32
            v = tok_tab_refs[i].shape[0]
            onehot = (ids == lax.broadcasted_iota(jnp.int32, (tile_s, v), 1)
                      ).astype(f32)
            emb = jnp.dot(onehot, tok_tab_refs[i][...].astype(f32),
                          preferred_element_type=f32,
                          precision=jax.lax.Precision.HIGHEST)
            acc = acc + (emb * w_ref[2 + i] if has_weights else emb)

        if has_weights:
            acc = acc + bias_ref[0]
        out_ref[...] = acc.astype(out_ref.dtype)

    return kernel


# --------------------------------------------------------------------------- #
# Large-vocab path: HBM tables, chunked + double-buffered row gather,
# one aggregate DMA wait per (table, chunk)
# --------------------------------------------------------------------------- #
def _make_hbm_kernel(num_tokens, tile_s, chunk, seg_vocab, has_weights):
    """Ref order: tok_ids (SMEM prefetch) x n, [w, bias]?, seg_ids, pe, seg_table,
    tok_tables (HBM) x n, out, gather_bufs x n, sems."""
    n_chunks = tile_s // chunk

    def kernel(*refs):
        p = num_tokens
        tok_ids_refs = refs[:num_tokens]
        if has_weights:
            w_ref, bias_ref = refs[p], refs[p + 1]
            p += 2
        seg_ids_ref = refs[p]; pe_ref = refs[p + 1]; seg_tab_ref = refs[p + 2]; p += 3
        tok_tab_refs = refs[p:p + num_tokens]; p += num_tokens
        out_ref = refs[p]; p += 1
        gbufs = refs[p:p + num_tokens]; p += num_tokens
        sems = refs[p]

        f32 = jnp.float32
        d_model = pe_ref.shape[1]
        t = pl.program_id(0)
        b = pl.program_id(1)
        seq0 = t * tile_s                                    # global seq offset

        # Hoisted segment rows / row-0 broadcast (JAX doesn't CSE broadcasts).
        seg_rows = [seg_tab_ref[k, :].astype(f32) for k in range(seg_vocab)]
        seg0 = jnp.broadcast_to(seg_rows[0], (chunk, d_model))

        def issue_chunk(c, slot):
            off = seq0 + c * chunk
            for i in range(num_tokens):
                tab, buf, ids = tok_tab_refs[i], gbufs[i], tok_ids_refs[i]

                def issue_row(s, _tab=tab, _buf=buf, _ids=ids, _i=i,
                              _slot=slot, _off=off):
                    row = _ids[b, _off + s]                  # scalar read (SMEM)
                    pltpu.make_async_copy(_tab.at[row], _buf.at[_slot, s],
                                          sems.at[_i, _slot]).start()

                _for_each(chunk, issue_row)

        issue_chunk(0, 0)

        for c in range(n_chunks):
            slot = c & 1
            # Prefetch next chunk's rows before waiting on the current chunk
            # (overlaps DMA with compute; keeps SMEM reads ahead of .wait()).
            if c + 1 < n_chunks:
                issue_chunk(c + 1, 1 - slot)

            # One aggregate wait per table: the descriptor's dst is the full
            # (chunk, D) landing buffer, matching the total bytes of the
            # `chunk` row copies issued on sems[i, slot].
            for i in range(num_tokens):
                pltpu.make_async_copy(tok_tab_refs[i].at[pl.ds(0, chunk)],
                                      gbufs[i].at[slot],
                                      sems.at[i, slot]).wait()

            roff = c * chunk                                 # static
            part = pe_ref[pl.ds(roff, chunk), :].astype(f32)
            if has_weights:
                part = part * w_ref[0]

            seg_ids = seg_ids_ref[pl.ds(roff, chunk), :]     # (chunk, 1)
            seg = seg0
            for k in range(1, seg_vocab):
                seg = jnp.where(seg_ids == k, seg_rows[k], seg)
            part = part + (seg * w_ref[1] if has_weights else seg)

            for i in range(num_tokens):
                tok = gbufs[i][slot].astype(f32)             # (chunk, D)
                part = part + (tok * w_ref[2 + i] if has_weights else tok)

            if has_weights:
                part = part + bias_ref[0]
            out_ref[pl.ds(roff, chunk), :] = part.astype(out_ref.dtype)

    return kernel


# --------------------------------------------------------------------------- #
# Wrapper
# --------------------------------------------------------------------------- #
def bert_input_embedding(pe, seg_table, tok_tables, seg_ids, tok_ids,
                         combine_w=None, combine_b=None, *,
                         tile_s=None, gather_chunk=None,
                         force_hbm_gather=False, out_dtype=jnp.float32):
    """pe:(S,D) seg_table:(Vs,D) tok_tables:list[(Vi,D)] seg_ids:(B,S) tok_ids:list[(B,S)]."""
    num_tokens = len(tok_tables)
    assert num_tokens >= 1
    B, S = seg_ids.shape
    D = pe.shape[1]
    V_seg = seg_table.shape[0]
    has_weights = combine_w is not None

    # Generation-aware VMEM budget (v5e/v6e: 128 MiB; v7x: 64 MiB per TC).
    try:
        vmem_cap = int(getattr(pltpu.get_tpu_info(), "vmem_capacity_bytes",
                               64 * 1024 * 1024))
    except Exception:
        vmem_cap = 64 * 1024 * 1024

    if tile_s is None:
        tile_s = min(S, 512)
    assert S % tile_s == 0, "tile_s must divide S"
    # t outer, b inner: pe's block index is constant across the inner batch
    # axis, so Pallas keeps the pe tile resident instead of re-DMAing it B x.
    grid = (S // tile_s, B)

    out_itemsize = jnp.dtype(out_dtype).itemsize
    id_blk_bytes = tile_s * 128 * 4                 # (tile_s,1) i32 pads to 128 lanes
    table_bytes = sum(int(tab.shape[0]) * int(tab.shape[1]) * tab.dtype.itemsize
                      for tab in tok_tables)

    # Small-vocab fast path: token tables resident in VMEM (DMA'd once),
    # gathered via one-hot MXU matmul instead of per-row DMAs.
    resident_budget = min(16 * 1024 * 1024, vmem_cap // 8)
    use_resident = (not force_hbm_gather) and (2 * table_bytes <= resident_budget)

    smem_spec = pl.BlockSpec(memory_space=pltpu.MemorySpace.SMEM)
    id_spec = pl.BlockSpec((None, tile_s, 1), lambda t, b, *_: (b, t, 0))
    pe_spec = pl.BlockSpec((tile_s, D), lambda t, b, *_: (t, 0))
    seg_tab_spec = pl.BlockSpec((V_seg, D), lambda t, b, *_: (0, 0))
    out_spec = pl.BlockSpec((None, tile_s, D), lambda t, b, *_: (b, t, 0))

    weight_args, weight_specs = [], []
    if has_weights:
        weight_args = [jnp.asarray(combine_w, jnp.float32).reshape(num_tokens + 2),
                       jnp.asarray(combine_b, jnp.float32).reshape(1)]
        weight_specs = [smem_spec, smem_spec]

    seg_ids_col = seg_ids.astype(jnp.int32)[:, :, None]

    common_blk = (2 * tile_s * D * 4                # pe (double-buffered)
                  + 2 * tile_s * D * out_itemsize   # out
                  + 2 * id_blk_bytes                # seg ids
                  + 2 * V_seg * D * 4)              # seg table

    if use_resident:
        tok_ids_col = [ids.astype(jnp.int32)[:, :, None] for ids in tok_ids]
        tab_specs = [pl.BlockSpec((int(tab.shape[0]), D), lambda t, b, *_: (0, 0))
                     for tab in tok_tables]
        in_specs = (weight_specs + [id_spec] * (1 + num_tokens)
                    + [pe_spec, seg_tab_spec] + tab_specs)
        call_args = (weight_args + [seg_ids_col] + tok_ids_col
                     + [pe, seg_table] + list(tok_tables))

        max_v = max(int(tab.shape[0]) for tab in tok_tables)
        blk = (common_blk + 2 * num_tokens * id_blk_bytes + 2 * table_bytes
               + num_tokens * tile_s * max(max_v, 128) * 4)   # one-hot temporaries
        kernel = _make_resident_kernel(num_tokens, tile_s, V_seg, has_weights)
        scratch = []
        num_prefetch = 0
    else:
        chunk = gather_chunk if gather_chunk is not None else min(tile_s, 64)
        assert tile_s % chunk == 0, "gather_chunk must divide tile_s"
        tok_ids32 = [ids.astype(jnp.int32) for ids in tok_ids]
        hbm_spec = pl.BlockSpec(memory_space=pl.ANY)          # no auto-DMA
        in_specs = (weight_specs + [id_spec, pe_spec, seg_tab_spec]
                    + [hbm_spec] * num_tokens)
        call_args = (tok_ids32 + weight_args
                     + [seg_ids_col, pe, seg_table] + list(tok_tables))
        scratch = ([pltpu.VMEM((2, chunk, D), tab.dtype) for tab in tok_tables]
                   + [pltpu.SemaphoreType.DMA((num_tokens, 2))])
        blk = common_blk + sum(2 * chunk * D * tab.dtype.itemsize
                               for tab in tok_tables)
        kernel = _make_hbm_kernel(num_tokens, tile_s, chunk, V_seg, has_weights)
        num_prefetch = num_tokens

    # Real footprint + ~50% headroom; never request v7x's full 64 MiB.
    vmem_limit = int(min(max(int(1.5 * blk) + (2 << 20), 16 << 20), 48 << 20))

    return pl.pallas_call(
        kernel,
        out_shape=jax.ShapeDtypeStruct((B, S, D), out_dtype),
        grid_spec=pltpu.PrefetchScalarGridSpec(
            num_scalar_prefetch=num_prefetch,
            grid=grid,
            in_specs=in_specs,
            out_specs=out_spec,
            scratch_shapes=scratch,
        ),
        compiler_params=pltpu.CompilerParams(
            dimension_semantics=("arbitrary", "parallel"),
            vmem_limit_bytes=vmem_limit,
        ),
    )(*call_args)


# --------------------------------------------------------------------------- #
# Reference / setup helpers
# --------------------------------------------------------------------------- #
def make_positional_table(d_model, max_len):
    """PositionalEmbedding buffer, computed exactly like the PyTorch init."""
    position = jnp.arange(max_len, dtype=jnp.float32)[:, None]
    div_term = jnp.exp(jnp.arange(0, d_model, 2, dtype=jnp.float32)
                       * (-(math.log(10000.0) / d_model)))
    angles = position * div_term
    pe = jnp.zeros((max_len, d_model), jnp.float32)
    pe = pe.at[:, 0::2].set(jnp.sin(angles))
    pe = pe.at[:, 1::2].set(jnp.cos(angles))
    return pe


def _ref_forward(pe, seg_table, tok_tables, seg_ids, tok_ids,
                 combine_w=None, combine_b=None):
    """Pure-JAX reference of BertInputEmbedding.forward (dropout in eval mode)."""
    B, S = seg_ids.shape
    D = pe.shape[1]
    pos = jnp.broadcast_to(pe[None], (B, S, D))
    seg = seg_table[seg_ids]
    stack = [pos, seg] + [tab[ids] for ids, tab in zip(tok_ids, tok_tables)]
    stacked = jnp.stack(stack, axis=3)                        # (B, S, D, K)
    if combine_w is None:
        return jnp.sum(stacked, axis=3)
    return jnp.einsum("bsdk,k->bsd", stacked, combine_w) + combine_b[0]


if __name__ == "__main__":
    key = jax.random.PRNGKey(0)
    D = 32
    input_name = ["tokens", "pos_tag"]
    input_vocab_size = {"tokens": 20, "pos_tag": 12}

    pe_full = make_positional_table(D, 512)

    # Segment embedding: vocab = 2 + 1, padding_idx = 0 (row 0 zeroed).
    key, k = jax.random.split(key)
    seg_table = jax.random.normal(k, (3, D), jnp.float32).at[0].set(0.0)

    # Token embeddings: vocab = input_vocab_size[name] + 4, padding_idx = 0.
    tok_tables = []
    for name in input_name:
        key, k = jax.random.split(key)
        V = input_vocab_size[name] + 4
        tok_tables.append(jax.random.normal(k, (V, D), jnp.float32).at[0].set(0.0))

    def make_ids(key, B, S):
        key, k = jax.random.split(key)
        seg_ids = jax.random.randint(k, (B, S), 0, 3, dtype=jnp.int32)
        tok_ids = []
        for name in input_name:
            key, k = jax.random.split(key)
            V = input_vocab_size[name] + 4
            tok_ids.append(jax.random.randint(k, (B, S), 0, V, dtype=jnp.int32))
        return key, seg_ids, tok_ids

    # ---- fast path (VMEM-resident tables, one-hot MXU gather), B=2, S=8 -----
    B, S = 2, 8
    pe = pe_full[:S]
    key, seg_ids, tok_ids = make_ids(key, B, S)

    out = jax.block_until_ready(
        bert_input_embedding(pe, seg_table, tok_tables, seg_ids, tok_ids))
    ref = _ref_forward(pe, seg_table, tok_tables, seg_ids, tok_ids)
    assert out.shape == (B, S, D)
    assert jnp.allclose(out, ref, atol=1e-5, rtol=1e-5), "mismatch (plain sum)"

    key, k = jax.random.split(key)
    comb_w = jax.random.normal(k, (len(input_name) + 2,), jnp.float32)
    key, k = jax.random.split(key)
    comb_b = jax.random.normal(k, (1,), jnp.float32)
    out_w = jax.block_until_ready(
        bert_input_embedding(pe, seg_table, tok_tables, seg_ids, tok_ids,
                             combine_w=comb_w, combine_b=comb_b))
    ref_w = _ref_forward(pe, seg_table, tok_tables, seg_ids, tok_ids,
                         combine_w=comb_w, combine_b=comb_b)
    assert jnp.allclose(out_w, ref_w, atol=1e-5, rtol=1e-5), "mismatch (combine)"

    # ---- large-vocab path (HBM gather, chunked + double-buffered, aggregate
    # waits), forced here on small tables so both paths are exercised ---------
    B2, S2 = 2, 16
    pe2 = pe_full[:S2]
    key, seg_ids2, tok_ids2 = make_ids(key, B2, S2)
    out_h = jax.block_until_ready(
        bert_input_embedding(pe2, seg_table, tok_tables, seg_ids2, tok_ids2,
                             tile_s=16, gather_chunk=8, force_hbm_gather=True))
    ref_h = _ref_forward(pe2, seg_table, tok_tables, seg_ids2, tok_ids2)
    assert jnp.allclose(out_h, ref_h, atol=1e-5, rtol=1e-5), "mismatch (hbm gather)"

    out_hw = jax.block_until_ready(
        bert_input_embedding(pe2, seg_table, tok_tables, seg_ids2, tok_ids2,
                             combine_w=comb_w, combine_b=comb_b,
                             tile_s=16, gather_chunk=8, force_hbm_gather=True))
    ref_hw = _ref_forward(pe2, seg_table, tok_tables, seg_ids2, tok_ids2,
                          combine_w=comb_w, combine_b=comb_b)
    assert jnp.allclose(out_hw, ref_hw, atol=1e-5, rtol=1e-5), "mismatch (hbm+combine)"

    print("KERNEL_OK")
</pallas_src>

<mosaic_0001>
module attributes {stable_mosaic.version = 11 : i64} {
  func.func @kernel(%arg0: i32, %arg1: i32, %arg2: memref<1x8x1xi32, #tpu.memory_space<vmem>>, %arg3: memref<1x8x1xi32, #tpu.memory_space<vmem>>, %arg4: memref<1x8x1xi32, #tpu.memory_space<vmem>>, %arg5: memref<8x32xf32, #tpu.memory_space<vmem>>, %arg6: memref<3x32xf32, #tpu.memory_space<vmem>>, %arg7: memref<24x32xf32, #tpu.memory_space<vmem>>, %arg8: memref<16x32xf32, #tpu.memory_space<vmem>>, %arg9: memref<1x8x32xf32, #tpu.memory_space<vmem>>) attributes {dimension_semantics = [#tpu.dimension_semantics<arbitrary>, #tpu.dimension_semantics<parallel>], iteration_bounds = array<i64: 1, 2>, scalar_prefetch = 0 : i64, scratch_operands = 0 : i64, tpu.core_type = #tpu.core_type<tc>, window_params = [{transform_indices = @transform_0, window_bounds = array<i64: 1, 8, 1>}, {transform_indices = @transform_1, window_bounds = array<i64: 1, 8, 1>}, {transform_indices = @transform_2, window_bounds = array<i64: 1, 8, 1>}, {transform_indices = @transform_3, window_bounds = array<i64: 8, 32>}, {pipeline_mode = #tpu.pipeline_mode<synchronous>, transform_indices = @transform_4, window_bounds = array<i64: 3, 32>}, {pipeline_mode = #tpu.pipeline_mode<synchronous>, transform_indices = @transform_5, window_bounds = array<i64: 24, 32>}, {pipeline_mode = #tpu.pipeline_mode<synchronous>, transform_indices = @transform_6, window_bounds = array<i64: 16, 32>}, {transform_indices = @transform_7, window_bounds = array<i64: 1, 8, 32>}]} {
    %c0 = arith.constant 0 : index
    %c0_0 = arith.constant 0 : index
    %0 = vector.load %arg5[%c0, %c0_0] : memref<8x32xf32, #tpu.memory_space<vmem>>, vector<8x32xf32>
    %c0_1 = arith.constant 0 : index
    %c0_2 = arith.constant 0 : index
    %c0_3 = arith.constant 0 : index
    %1 = vector.load %arg2[%c0_1, %c0_2, %c0_3] : memref<1x8x1xi32, #tpu.memory_space<vmem>>, vector<1x8x1xi32>
    %2 = vector.shape_cast %1 : vector<1x8x1xi32> to vector<8x1xi32>
    %c0_4 = arith.constant 0 : index
    %c0_5 = arith.constant 0 : index
    %3 = vector.load %arg6[%c0_4, %c0_5] : memref<3x32xf32, #tpu.memory_space<vmem>>, vector<1x32xf32>
    %4 = vector.shape_cast %3 : vector<1x32xf32> to vector<32xf32>
    %c1 = arith.constant 1 : index
    %c0_6 = arith.constant 0 : index
    %5 = vector.load %arg6[%c1, %c0_6] : memref<3x32xf32, #tpu.memory_space<vmem>>, vector<1x32xf32>
    %6 = vector.shape_cast %5 : vector<1x32xf32> to vector<32xf32>
    %c2 = arith.constant 2 : index
    %c0_7 = arith.constant 0 : index
    %7 = vector.load %arg6[%c2, %c0_7] : memref<3x32xf32, #tpu.memory_space<vmem>>, vector<1x32xf32>
    %8 = vector.shape_cast %7 : vector<1x32xf32> to vector<32xf32>
    %9 = vector.shape_cast %4 : vector<32xf32> to vector<1x32xf32>
    %10 = vector.broadcast %9 : vector<1x32xf32> to vector<8x32xf32>
    %c1_i32 = arith.constant 1 : i32
    %11 = vector.broadcast %c1_i32 : i32 to vector<8x1xi32>
    %12 = arith.cmpi eq, %2, %11 : vector<8x1xi32>
    %13 = vector.shape_cast %12 : vector<8x1xi1> to vector<8x1xi1>
    %14 = vector.broadcast %13 : vector<8x1xi1> to vector<8x32xi1>
    %15 = vector.shape_cast %6 : vector<32xf32> to vector<1x32xf32>
    %16 = vector.broadcast %15 : vector<1x32xf32> to vector<8x32xf32>
    %17 = arith.select %14, %16, %10 : vector<8x32xi1>, vector<8x32xf32>
    %c2_i32 = arith.constant 2 : i32
    %18 = vector.broadcast %c2_i32 : i32 to vector<8x1xi32>
    %19 = arith.cmpi eq, %2, %18 : vector<8x1xi32>
    %20 = vector.shape_cast %19 : vector<8x1xi1> to vector<8x1xi1>
    %21 = vector.broadcast %20 : vector<8x1xi1> to vector<8x32xi1>
    %22 = vector.shape_cast %8 : vector<32xf32> to vector<1x32xf32>
    %23 = vector.broadcast %22 : vector<1x32xf32> to vector<8x32xf32>
    %24 = arith.select %21, %23, %17 : vector<8x32xi1>, vector<8x32xf32>
    %25 = arith.addf %0, %24 : vector<8x32xf32>
    %c0_8 = arith.constant 0 : index
    %c0_9 = arith.constant 0 : index
    %c0_10 = arith.constant 0 : index
    %26 = vector.load %arg3[%c0_8, %c0_9, %c0_10] : memref<1x8x1xi32, #tpu.memory_space<vmem>>, vector<1x8x1xi32>
    %27 = vector.shape_cast %26 : vector<1x8x1xi32> to vector<8x1xi32>
    %28 = tpu.iota {dimensions = array<i32: 1>} : vector<8x24xi32>
    %29 = vector.broadcast %27 : vector<8x1xi32> to vector<8x24xi32>
    %30 = arith.cmpi eq, %29, %28 : vector<8x24xi32>
    %31 = arith.extui %30 : vector<8x24xi1> to vector<8x24xi32>
    %32 = arith.sitofp %31 : vector<8x24xi32> to vector<8x24xf32>
    %c0_11 = arith.constant 0 : index
    %c0_12 = arith.constant 0 : index
    %33 = vector.load %arg7[%c0_11, %c0_12] : memref<24x32xf32, #tpu.memory_space<vmem>>, vector<24x32xf32>
    %cst = arith.constant dense<0.000000e+00> : vector<8x32xf32>
    %34 = tpu.matmul %32, %33, %cst {dimension_numbers = #tpu.dot_dimension_numbers<[1], [0], [0], [1], [0, 0, 1, 1], [], []>, precision = #tpu.contract_precision<fp32>} : vector<8x24xf32>, vector<24x32xf32>, vector<8x32xf32> -> vector<8x32xf32>
    %35 = arith.addf %25, %34 : vector<8x32xf32>
    %c0_13 = arith.constant 0 : index
    %c0_14 = arith.constant 0 : index
    %c0_15 = arith.constant 0 : index
    %36 = vector.load %arg4[%c0_13, %c0_14, %c0_15] : memref<1x8x1xi32, #tpu.memory_space<vmem>>, vector<1x8x1xi32>
    %37 = vector.shape_cast %36 : vector<1x8x1xi32> to vector<8x1xi32>
    %38 = tpu.iota {dimensions = array<i32: 1>} : vector<8x16xi32>
    %39 = vector.broadcast %37 : vector<8x1xi32> to vector<8x16xi32>
    %40 = arith.cmpi eq, %39, %38 : vector<8x16xi32>
    %41 = arith.extui %40 : vector<8x16xi1> to vector<8x16xi32>
    %42 = arith.sitofp %41 : vector<8x16xi32> to vector<8x16xf32>
    %c0_16 = arith.constant 0 : index
    %c0_17 = arith.constant 0 : index
    %43 = vector.load %arg8[%c0_16, %c0_17] : memref<16x32xf32, #tpu.memory_space<vmem>>, vector<16x32xf32>
    %cst_18 = arith.constant dense<0.000000e+00> : vector<8x32xf32>
    %44 = tpu.matmul %42, %43, %cst_18 {dimension_numbers = #tpu.dot_dimension_numbers<[1], [0], [0], [1], [0, 0, 1, 1], [], []>, precision = #tpu.contract_precision<fp32>} : vector<8x16xf32>, vector<16x32xf32>, vector<8x32xf32> -> vector<8x32xf32>
    %45 = arith.addf %35, %44 : vector<8x32xf32>
    %c0_19 = arith.constant 0 : index
    %c0_20 = arith.constant 0 : index
    %c0_21 = arith.constant 0 : index
    %46 = vector.load %arg9[%c0_19, %c0_20, %c0_21] : memref<1x8x32xf32, #tpu.memory_space<vmem>>, vector<1x8x32xf32>
    %47 = vector.shape_cast %46 : vector<1x8x32xf32> to vector<8x32xf32>
    %48 = vector.shape_cast %45 : vector<8x32xf32> to vector<1x8x32xf32>
    tpu.vector_store %arg9[%c0_19, %c0_20, %c0_21], %48 {strides = array<i32>} : memref<1x8x32xf32, #tpu.memory_space<vmem>>, vector<1x8x32xf32>,
    return
  }
  func.func @transform_0(%arg0: i32, %arg1: i32) -> (i32, i32, i32) {
    %c0_i32 = arith.constant 0 : i32
    %c0_i32_0 = arith.constant 0 : i32
    return %arg1, %arg0, %c0_i32 : i32, i32, i32
  }
  func.func @transform_1(%arg0: i32, %arg1: i32) -> (i32, i32, i32) {
    %c0_i32 = arith.constant 0 : i32
    %c0_i32_0 = arith.constant 0 : i32
    return %arg1, %arg0, %c0_i32 : i32, i32, i32
  }
  func.func @transform_2(%arg0: i32, %arg1: i32) -> (i32, i32, i32) {
    %c0_i32 = arith.constant 0 : i32
    %c0_i32_0 = arith.constant 0 : i32
    return %arg1, %arg0, %c0_i32 : i32, i32, i32
  }
  func.func @transform_3(%arg0: i32, %arg1: i32) -> (i32, i32) {
    %c0_i32 = arith.constant 0 : i32
    %c0_i32_0 = arith.constant 0 : i32
    return %arg0, %c0_i32 : i32, i32
  }
  func.func @transform_4(%arg0: i32, %arg1: i32) -> (i32, i32) {
    %c0_i32 = arith.constant 0 : i32
    %c0_i32_0 = arith.constant 0 : i32
    %c0_i32_1 = arith.constant 0 : i32
    return %c0_i32, %c0_i32_0 : i32, i32
  }
  func.func @transform_5(%arg0: i32, %arg1: i32) -> (i32, i32) {
    %c0_i32 = arith.constant 0 : i32
    %c0_i32_0 = arith.constant 0 : i32
    %c0_i32_1 = arith.constant 0 : i32
    return %c0_i32, %c0_i32_0 : i32, i32
  }
  func.func @transform_6(%arg0: i32, %arg1: i32) -> (i32, i32) {
    %c0_i32 = arith.constant 0 : i32
    %c0_i32_0 = arith.constant 0 : i32
    %c0_i32_1 = arith.constant 0 : i32
    return %c0_i32, %c0_i32_0 : i32, i32
  }
  func.func @transform_7(%arg0: i32, %arg1: i32) -> (i32, i32, i32) {
    %c0_i32 = arith.constant 0 : i32
    %c0_i32_0 = arith.constant 0 : i32
    return %arg1, %arg0, %c0_i32 : i32, i32, i32
  }
}

</mosaic_0001>

<bundles_post_ra>
// kernel: tpu_custom_call.1
= control target key start
LH: loop header
LB: loop body
LE: loop exit
PB: predicated region body
PF: predicated region fallthrough
CT: control target
= control target key end

     0   :  { %12 = vsyncpa [#allocation3], 0  ;;  %s2126_s0 = inlined_call_operand.vmem [shape: s32[2,8,1], index: 0, kind: input, shape index: {}]   ;;  %s2127_s1 = inlined_call_operand.vmem [shape: s32[2,8,1], index: 1, kind: input, shape index: {}]   ;;  %s2128_s2 = inlined_call_operand.vmem [shape: s32[2,8,1], index: 2, kind: input, shape index: {}]   ;;  %s2129_s3 = inlined_call_operand.vmem [shape: f32[8,32], index: 3, kind: input, shape index: {}]   ;;  %s2130_s4 = inlined_call_operand.vmem [shape: f32[3,32], index: 4, kind: input, shape index: {}]   ;;  %s2131_s5 = inlined_call_operand.vmem [shape: f32[24,32], index: 5, kind: input, shape index: {}]   ;;  %s2132_s6 = inlined_call_operand.vmem [shape: f32[16,32], index: 6, kind: input, shape index: {}]   ;;  %s2133_s7 = inlined_call_operand.hbm [shape: f32[2,8,32], index: 7, kind: output, shape index: {}]  }
   0x1   :  { %14 = vsyncpa [#allocation3 + $0x1], 0  ;;  %s1844_s24 = smov 0   ;;  %s1846_s25 = smov 0  }
   0x2   :  { %s1848_s26 = smov 0   ;;  %s1850_s27 = smov 0  }
   0x3   :  { %s1852_s28 = smov 0   ;;  %s1854_s29 = smov 0  }
   0x4 LB: > { %s1499_s30 = sadd.s32 4294967295, %s1798_s29   ;;  %s1500_s8 = sadd.s32 4294967294, %s1798_s29   ;;  %s1798_s29 = sphi %s1854_s29, %s20_s29   ;;  %s1794_s28 = sphi %s1852_s28, %s2140_s28   ;;  %s1790_s27 = sphi %s1850_s27, %s2139_s27   ;;  %s1786_s26 = sphi %s1848_s26, %s2138_s26   ;;  %s1782_s25 = sphi %s1846_s25, %s2137_s25   ;;  %s1778_s24 = sphi %s1844_s24, %s2136_s24  }
   0x5   : > { %s29_s9 = sadd.s32 1, %s1794_s28  ;;  %s214_s10 = sadd.s32 1, %s1786_s26 }
   0x6   : > { %p30_p0 = scmp.ge.s32.totalorder %s29_s9, 2  ;;  %p224_p1 = scmp.ne.s32.totalorder %s1786_s26, %s1782_s25 }
   0x7   : > { %p225_p2 = scmp.eq.s32.totalorder %s1499_s30, 1  ;;  %p230_p3 = scmp.ne.s32.totalorder %s1782_s25, %s1778_s24 }
   0x8   : > { %s2142_s9 = smov (%p30_p0, %s29_s9), 0  ;;  %p231_p5 = scmp.eq.s32.totalorder %s1500_s8, 1 }
   0x9   : > { %p1884_p4 = por %p225_p2, %p224_p1  ;;  %s209_s12 = ssub.s32 %s1794_s28, %s2142_s9 }
   0xa   : > { %p1504_p6 = scmp.ge.s32.totalorder %s1798_s29, 1  ;;  %p212_p7 = scmp.eq.s32.totalorder %s209_s12, 0 }
   0xb   : > { %p1891_p8 = por %p231_p5, %p230_p3  ;;  %p295_p9 = scmp.lt.s32.totalorder %s1798_s29, 3 }
   0xc   : > { %s1897_s14 = scalar_select %p212_p7, %s1786_s26, %s214_s10  }
   0xd   : > { %p296_p10 = pnand %p1504_p6, %p295_p9 }
   0xe   : > { %p347_p11 = scmp.lt.s32.totalorder (!%p296_p10), %s1790_s27, 1  ;;  %s344_s16 = sand.u32 (!%p296_p10), 1, %s1782_s25  }
   0xf   : > { %299 = sbr.rel (%p296_p10) target bundleno = 402 (0x192), region = 48  ;;  %s1505_s19 = sshll.u32 (!%p296_p10), %s344_s16, 3 }
  0x10   : > { %s1521_s20 = sshll.u32 (!%p296_p10), %s1790_s27, 7  ;;  %s1369_s10 = scalar_lea.sflag (!%p296_p10), [#allocation3], %s344_s16 }
  0x14   : > { %v415_v0 = vld [vmem:[%s2131_s5 + $0x10] sm:$0xff]  ;;  %v414_v1 = vld [vmem:[%s2131_s5 + $0x8] sm:$0xff]  ;;  %v413_v2 = vld [vmem:[%s2131_s5] sm:$0xff]  ;;  %v1800_v3 = vmov 0   ;;  %v1801_v4 = vmov 0.0   ;;  %s348_s21 = scalar_select %p347_p11, %s1790_s27, 1  ;;  %v405_v25 = vlaneseq }
  0x15   : > { %1720 = vset.pattern.permute.xlu0 %v1800_v3  ;;  %1575 = vmatprep.subr.mxu1 %v1801_v4  ;;  %v1910_v5 = vand.u32 4294901760, %v415_v0  ;;  %v1912_v6 = vand.u32 4294901760, %v414_v1  ;;  %v1914_v7 = vand.u32 4294901760, %v413_v2  ;;  %vm1802_vm0 = vmmov 0   ;;  %v901_v26 = vld [vmem:[%s2132_s6 + $0x8] sm:$0xff]  ;;  %v900_v29 = vld [vmem:[%s2132_s6] sm:$0xff] }
  0x16   : > { %1566 = vmatprep.subr.mxu0 %v1801_v4  ;;  %1721 = vset.pattern.permute.xlu1 %v1800_v3  ;;  %s1928_s22 = sshll.u32 %s348_s21, 3  ;;  %v406_v27 = vand.u32 127, %v405_v25  ;;  %v1969_v28 = vand.u32 4294901760, %v901_v26  ;;  %vm416_vm3 = vcmask 195584   ;;  %v1974_v31 = vand.u32 4294901760, %v900_v29  ;;  %s346_s21 = scalar_lea.vmem [#allocation2], %s1505_s19 }
  0x17   : > { %v1919_v8 = vsub.f32 %v415_v0, %v1910_v5  ;;  %v1922_v9 = vsub.f32 %v414_v1, %v1912_v6  ;;  %v1925_v10 = vsub.f32 %v413_v2, %v1914_v7  ;;  %1567 = vmatpush3.msra.mxu0 %v1910_v5  ;;  %1581 = vmatprep.mubr.msk.f32.mxu1 %vm1802_vm0, %v1801_v4  ;;  %s360_s8 = scalar_lea.vmem %s2127_s1, %s1928_s22  ;;  %s367_s15 = scalar_lea.vmem %s2128_s2, %s1928_s22  ;;  %vm902_vm6 = vcmask 130048  }
  0x18   : > { %1568 = vmatprep.subr.mxu0 %v1801_v4  ;;  %1572 = vmatprep.mubr.msk.f32.mxu0 %vm1802_vm0, %v1801_v4  ;;  %v404_v14 = vld [vmem:[%s360_s8] sm:$0xff]  ;;  %s353_s18 = scalar_lea.vmem %s2126_s0, %s1928_s22  ;;  %v1977_v32 = vsub.f32 %v901_v26, %v1969_v28  ;;  %v1990_v36 = vsub.f32 %v900_v29, %v1974_v31  ;;  %s1383_s23 = sshll.u32 %s346_s21, 4  ;;  %vm1366_vm9 = vcmask 261120   ;;  %s1384_s23 = int_to_ptr.vmem [resolvable:$true] %s1383_s23 }
  0x19   : > { %v527_v11 = vand.u32 4294901760, %v1919_v8  ;;  %v534_v12 = vand.u32 4294901760, %v1922_v9  ;;  %v541_v13 = vand.u32 4294901760, %v1925_v10  ;;  %1569 = vmatpush3.msra.mxu0 %v1912_v6  ;;  %408 = vperm.xlu0 %1720, %v404_v14   ;;  %v893_v18 = vld [vmem:[%s367_s15] sm:$0xff]  ;;  %s1381_s8 = scalar_lea.hbm %s2133_s7, %s1521_s20  ;;  %s1722_s12 = scalar_lea.vmem %s1384_s23, 128 }
  0x1a   : > { %1570 = vmatprep.subr.mxu0 %v1801_v4  ;;  %v373_v22 = vld [vmem:[%s353_s18] sm:$0xff]  ;;  %v1014_v37 = vand.u32 4294901760, %v1977_v32  ;;  %v1021_v41 = vand.u32 4294901760, %v1990_v36  ;;  %p1723_p12 = scmp.ne.s32.totalorder %s1384_s23, %s1722_s12  ;;  %s1803_s15 = smov [#allocation2]  }
  0x1b   : > { %v528_v15 = vsub.f32 %v1919_v8, %v527_v11  ;;  %v535_v16 = vsub.f32 %v1922_v9, %v534_v12  ;;  %v542_v17 = vsub.f32 %v1925_v10, %v541_v13  ;;  %1571 = vmatpush3.msra.mxu0 %v1914_v7  ;;  %vm381_vm1 = vcmp.eq.s32.totalorder %v373_v22, 1  ;;  %s1726_s27 = sshll.u32 %s1803_s15, 4  ;;  %s1727_s27 = int_to_ptr.vmem [resolvable:$false] %s1726_s27 }
  0x1c   : > { %1584 = vmatprep.subr.mxu0 %v1801_v4  ;;  %vm392_vm2 = vcmp.eq.s32.totalorder %v373_v22, 2  ;;  %v382_v23 = vsel %vm381_vm1, 1, %v1800_v3  ;;  %v1015_v42 = vsub.f32 %v1977_v32, %v1014_v37  ;;  %v1022_v44 = vsub.f32 %v1990_v36, %v1021_v41  ;;  %p1724_p13 = pnand %p1723_p12, %p1884_p4  ;;  %s1728_s17 = scalar_lea.vmem %s1727_s27, 256 }
  0x1d   : > { %v529_v19 = vand.u32 4294901760, %v528_v15  ;;  %v536_v20 = vand.u32 4294901760, %v535_v16  ;;  %895 = vperm.xlu0 %1720, %v893_v18   ;;  %v543_v21 = vand.u32 4294901760, %v542_v17  ;;  %384 = vperm.xlu1 %1721, %v382_v23   ;;  %v393_v24 = vsel %vm392_vm2, 1, %v1800_v3  ;;  %v1511_v15 = vld [vmem:[%s2130_s4 + $0x2] ss:$0 sm:$0xff]  ;;  %p1729_p1 = scmp.lt.s32.totalorder %s1384_s23, %s1727_s27  ;;  %p1730_p2 = scmp.lt.s32.totalorder %s1728_s17, %s1722_s12 }
  0x1e   : > { %v1016_v46 = vand.u32 4294901760, %v1015_v42  ;;  %v1023_v48 = vand.u32 4294901760, %v1022_v44  ;;  %p1725_p0 = pneg %p1724_p13 }
  0x1f   : > { %1576 = vmatpush3.msra.mxu1 %v529_v19  ;;  %p1731_p3 = por %p1730_p2, %p1729_p1 }
  0x20   : > { %1577 = vmatprep.subr.mxu1 %v1801_v4 }
  0x21   : > { %1578 = vmatpush3.msra.mxu1 %v536_v20  ;;  %395 = vperm.xlu1 %1721, %v393_v24   ;;  %v372_v20 = vld [vmem:[%s2129_s3] sm:$0xff]  ;;  %p1732_p5 = pnand %p1731_p3, %p1725_p0 }
  0x22   : > { %1579 = vmatprep.subr.mxu1 %v1801_v4 }
  0x23   : > { %1580 = vmatpush3.msra.mxu1 %v543_v21 }
  0x24   : > { %1593 = vmatprep.subr.mxu1 %v1801_v4 }
  0x94   : > { %v409_v30 = vpop.permute.xlu0 %408 }
  0x95   : > { %vm410_vm4 = vcmp.eq.s32.totalorder %v409_v30, %v406_v27 }
  0x96   : > { %v1980_v33 = vsel %vm410_vm4, 1.0, %v1801_v4 }
  0x97   : > { %v418_v34 = vsel %vm416_vm3, %v1980_v33, 0  ;;  %1582 = vmatmul.mubr.msk.f32.vlgmr.msra.gmra.mxu1 %vm416_vm3, %v1980_v33 }
  0x98   : > { %v489_v35 = vsub.f32 %v418_v34, %v418_v34  ;;  %1594 = vmatpush3.msra.mxu1 %v1910_v5  ;;  %1599 = vmatprep.mubr.msk.f32.mxu1 %vm1802_vm0, %v1801_v4  ;;  %v896_v39 = vpop.permute.xlu0 %895  ;;  %v385_v1 = vpop.permute.xlu1 %384 }
  0x99   : > { %1595 = vmatprep.subr.mxu1 %v1801_v4  ;;  %vm897_vm5 = vcmp.eq.s32.totalorder %v896_v39, %v406_v27  ;;  %vm386_vm7 = vcmp.eq.s32.totalorder %v385_v1, 1 }
  0x9a   : > { %1596 = vmatpush3.msra.mxu1 %v1912_v6  ;;  %v490_v38 = vand.u32 4294901760, %v489_v35  ;;  %v1516_v45 = vsel %vm897_vm5, 1.0, %v1801_v4 }
  0x9b   : > { %1597 = vmatprep.subr.mxu1 %v1801_v4  ;;  %v904_v47 = vsel %vm902_vm6, %v1516_v45, 0 }
  0x9c   : > { %1598 = vmatpush3.msra.mxu1 %v1914_v7  ;;  %v491_v40 = vsub.f32 %v489_v35, %v490_v38  ;;  %v974_v49 = vsub.f32 %v904_v47, %v904_v47 }
  0x9d   : > { %1600 = vmatmul.mubr.f32.vlgmr.msra.gmra.mxu1 %v490_v38  ;;  %1611 = vmatprep.subr.mxu1 %v1801_v4 }
  0x9e   : > { %1612 = vmatpush3.msra.mxu1 %v1910_v5  ;;  %v492_v43 = vand.u32 4294901760, %v491_v40  ;;  %1617 = vmatprep.mubr.msk.f32.mxu1 %vm1802_vm0, %v1801_v4  ;;  %v975_v50 = vand.u32 4294901760, %v974_v49 }
  0x9f   : > { %1613 = vmatprep.subr.mxu1 %v1801_v4 }
  0xa0   : > { %1614 = vmatpush3.msra.mxu1 %v1912_v6  ;;  %1573 = vmatmul.mubr.f32.vlgmr.msra.gmra.mxu0 %v492_v43  ;;  %v976_v51 = vsub.f32 %v974_v49, %v975_v50 }
  0xa1   : > { %1585 = vmatpush3.msra.mxu0 %v1919_v8  ;;  %1615 = vmatprep.subr.mxu1 %v1801_v4  ;;  %v1509_v8 = vld [vmem:[%s2130_s4] ss:$0 sm:$0xff] }
  0xa2   : > { %1586 = vmatprep.subr.mxu0 %v1801_v4  ;;  %1616 = vmatpush3.msra.mxu1 %v1914_v7  ;;  %v977_v52 = vand.u32 4294901760, %v976_v51 }
  0xa3   : > { %1587 = vmatpush3.msra.mxu0 %v1922_v9  ;;  %1618 = vmatmul.mubr.msk.f32.vlgmr.msra.gmra.mxu1 %vm416_vm3, %v1980_v33  ;;  %v1510_v9 = vld [vmem:[%s2130_s4 + $0x1] ss:$0 sm:$0xff] }
  0xa4   : > { %1627 = vmatprep.subr.mxu1 %v1801_v4  ;;  %1588 = vmatprep.subr.mxu0 %v1801_v4 }
  0xa5   : > { %1628 = vmatpush3.msra.mxu1 %v1016_v46  ;;  %1589 = vmatpush3.msra.mxu0 %v1925_v10  ;;  %v396_v10 = vpop.permute.xlu1 %395 }
  0xa6   : > { %1590 = vmatprep.mubr.msk.f32.mxu0 %vm1802_vm0, %v1801_v4  ;;  %1629 = vmatprep.subr.mxu1 %v1801_v4  ;;  %vm397_vm8 = vcmp.eq.s32.totalorder %v396_v10, 1 }
  0xa7   : > { %1591 = vmatmul.mubr.f32.vlgmr.msra.gmra.mxu0 %v489_v35  ;;  %1602 = vmatprep.subr.mxu0 %v1801_v4 }
  0xa8   : > { %1630 = vmatpush3.msra.mxu1 %v1023_v48  ;;  %1631 = vmatprep.mubr.msk.f32.mxu1 %vm1802_vm0, %v1801_v4 }
  0xa9   : > { %1603 = vmatpush3.msra.mxu0 %v527_v11  ;;  %1632 = vmatmul.mubr.msk.f32.vlgmr.msra.gmra.mxu1 %vm902_vm6, %v1516_v45 }
  0xaa   : > { %1641 = vmatprep.subr.mxu1 %v1801_v4  ;;  %1604 = vmatprep.subr.mxu0 %v1801_v4 }
  0xab   : > { %1642 = vmatpush3.msra.mxu1 %v1969_v28  ;;  %1605 = vmatpush3.msra.mxu0 %v534_v12 }
  0xac   : > { %1643 = vmatprep.subr.mxu1 %v1801_v4  ;;  %1606 = vmatprep.subr.mxu0 %v1801_v4 }
  0xad   : > { %1644 = vmatpush3.msra.mxu1 %v1974_v31  ;;  %1645 = vmatprep.mubr.msk.f32.mxu1 %vm1802_vm0, %v1801_v4 }
  0xae   : > { %1607 = vmatpush3.msra.mxu0 %v541_v13  ;;  %1608 = vmatprep.mubr.msk.f32.mxu0 %vm1802_vm0, %v1801_v4  ;;  %v391_v13 = vsel %vm386_vm7, %v1510_v9, %v1509_v8 }
  0xaf   : > { %1646 = vmatmul.mubr.f32.vlgmr.msra.gmra.mxu1 %v975_v50  ;;  %1655 = vmatprep.subr.mxu1 %v1801_v4  ;;  %v402_v21 = vsel %vm397_vm8, %v1511_v15, %v391_v13 }
  0xb0   : > { %1609 = vmatmul.mubr.msk.f32.vlgmr.msra.gmra.mxu0 %vm416_vm3, %v1980_v33  ;;  %1620 = vmatprep.subr.mxu0 %v1801_v4  ;;  %v403_v26 = vadd.f32 %v402_v21, %v372_v20 }
  0xb1   : > { %1656 = vmatpush3.msra.mxu1 %v1969_v28  ;;  %1621 = vmatpush3.msra.mxu0 %v1969_v28 }
  0xb2   : > { %1657 = vmatprep.subr.mxu1 %v1801_v4  ;;  %1622 = vmatprep.subr.mxu0 %v1801_v4 }
  0xb3   : > { %1658 = vmatpush3.msra.mxu1 %v1974_v31  ;;  %1659 = vmatprep.mubr.msk.f32.mxu1 %vm1802_vm0, %v1801_v4 }
  0xb4   : > { %1623 = vmatpush3.msra.mxu0 %v1974_v31  ;;  %1624 = vmatprep.mubr.msk.f32.mxu0 %vm1802_vm0, %v1801_v4 }
  0xb5   : > { %1660 = vmatmul.mubr.msk.f32.vlgmr.msra.gmra.mxu1 %vm902_vm6, %v1516_v45  ;;  %1625 = vmatmul.mubr.f32.vlgmr.msra.gmra.mxu0 %v977_v52 }
  0xb6   : > { %1634 = vmatprep.subr.mxu0 %v1801_v4  ;;  %1638 = vmatprep.mubr.msk.f32.mxu0 %vm1802_vm0, %v1801_v4 }
  0xb7   : > { %1635 = vmatpush3.msra.mxu0 %v1977_v32 }
  0xb8   : > { %1636 = vmatprep.subr.mxu0 %v1801_v4 }
  0xb9   : > { %1637 = vmatpush3.msra.mxu0 %v1990_v36 }
  0xba   : > { %1639 = vmatmul.mubr.f32.vlgmr.msra.gmra.mxu0 %v974_v49  ;;  %1648 = vmatprep.subr.mxu0 %v1801_v4 }
  0xbb   : > { %1649 = vmatpush3.msra.mxu0 %v1014_v37  ;;  %1652 = vmatprep.mubr.msk.f32.mxu0 %vm1802_vm0, %v1801_v4 }
  0xbc   : > { %1650 = vmatprep.subr.mxu0 %v1801_v4 }
  0xbd   : > { %1651 = vmatpush3.msra.mxu0 %v1021_v41 }
  0xbe   : > { %1653 = vmatmul.mubr.msk.f32.vlgmr.msra.gmra.mxu0 %vm902_vm6, %v1516_v45 }
 0x157   : > { %v580_v53 = vpop.f32.mrf.mxu1 }
 0x159   : > { %v1583_v54 = vpop.f32.mrf.mxu1 }
 0x15d   : > { %v734_v55 = vpop.f32.mrf.mxu1 }
 0x15f   : > { %v1601_v56 = vpop.f32.mrf.mxu1 }
 0x160   : > { %v494_v57 = vpop.f32.mrf.mxu0 }
 0x161   : > { %v581_v4 = vadd.f32 %v580_v53, %v494_v57 }
 0x162   : > { %v1574_v58 = vpop.f32.mrf.mxu0 }
 0x163   : > { %v888_v59 = vpop.f32.mrf.mxu1 }
 0x165   : > { %v1619_v60 = vpop.f32.mrf.mxu1 }
 0x167   : > { %v658_v61 = vpop.f32.mrf.mxu0 }
 0x168   : > { %v659_v7 = vadd.f32 %v658_v61, %v581_v4 }
 0x169   : > { %v1060_v62 = vpop.f32.mrf.mxu1  ;;  %v1592_v63 = vpop.f32.mrf.mxu0 }
 0x16a   : > { %v735_v14 = vadd.f32 %v734_v55, %v659_v7 }
 0x16b   : > { %v1633_v0 = vpop.f32.mrf.mxu1 }
 0x16f   : > { %v1211_v2 = vpop.f32.mrf.mxu1 }
 0x170   : > { %v814_v3 = vpop.f32.mrf.mxu0 }
 0x171   : > { %v1647_v5 = vpop.f32.mrf.mxu1  ;;  %v815_v18 = vadd.f32 %v814_v3, %v735_v14 }
 0x172   : > { %v1610_v6 = vpop.f32.mrf.mxu0 }
 0x173   : > { %v889_v25 = vadd.f32 %v888_v59, %v815_v18 }
 0x175   : > { %v1361_v11 = vpop.f32.mrf.mxu1  ;;  %v979_v12 = vpop.f32.mrf.mxu0  ;;  %v892_v31 = vadd.f32 %v889_v25, %v403_v26 }
 0x176   : > { %v1061_v19 = vadd.f32 %v1060_v62, %v979_v12 }
 0x177   : > { %v1661_v16 = vpop.f32.mrf.mxu1  ;;  %v1626_v17 = vpop.f32.mrf.mxu0 }
 0x17a   : > { %v1136_v22 = vpop.f32.mrf.mxu0 }
 0x17b   : > { %v1137_v23 = vadd.f32 %v1136_v22, %v1061_v19 }
 0x17c   : > { %v1640_v24 = vpop.f32.mrf.mxu0 }
 0x17d   : > { %v1212_v27 = vadd.f32 %v1211_v2, %v1137_v23 }
 0x17e   : > { %v1288_v28 = vpop.f32.mrf.mxu0 }
 0x17f   : > { %v1289_v29 = vadd.f32 %v1288_v28, %v1212_v27 }
 0x180   : > { %v1654_v30 = vpop.f32.mrf.mxu0 }
 0x181   : > { %v1362_v32 = vadd.f32 %v1361_v11, %v1289_v29 }
 0x183   : > { %v1365_v33 = vadd.f32 %v1362_v32, %v892_v31 }
 0x185   : > { %1367 = vst.msk [vmem:[%s346_s21] sm:$0xff] %vm1366_vm9, %v1365_v33 }
 0x186   : > { %1735 = shalt.err (!%p1732_p5)
}
 0x187   : > { %s1736_s18 = scalar_lea.hbm %s1381_s8, 128  ;;  %s1740_s20 = scalar_lea.hbm %s2133_s7, 256 }
 0x188   : > { %p1737_p6 = scmp.ne.s32.totalorder %s1381_s8, %s1736_s18  ;;  %p1741_p10 = scmp.lt.s32.totalorder %s1381_s8, %s2133_s7 }
 0x189   : > { %p1742_p11 = scmp.lt.s32.totalorder %s1740_s20, %s1736_s18 }
 0x18a   : > { %p1738_p7 = pnand %p1737_p6, %p1884_p4 }
 0x18b   : > { %p1743_p12 = por %p1742_p11, %p1741_p10 }
 0x18c   : > { %p1739_p9 = pneg %p1738_p7 }
 0x18e   : > { %p1744_p13 = pnand %p1743_p12, %p1739_p9 }
 0x190   : > { %1747 = shalt.err (!%p1744_p13)
}
 0x191   : > { %1662 = dma.vmem_to_hbm [thread:$0]  (%p1884_p4), %s1384_s23, 128, %s1381_s8, %s1369_s10  }
 0x192 PF: > { %p1668_p0 = scmp.ge.s32.totalorder %s1798_s29, 2  ;;  %s1395_s30 = sand.u32 1, %s1778_s24  }
 0x193   : > { %s1396_s12 = scalar_lea.sflag [#allocation3], %s1395_s30 }
 0x194   : > { %p1665_p1 = pnand %p1668_p0, %p1891_p8 }
 0x196   : > { %p1666_p2 = pneg %p1665_p1 }
 0x198   : > { %1773 = dma.done.wait (%p1666_p2), %s1396_s12, 128  }
 0x199   : > { %1775 = vsyncadd (%p1666_p2), %s1396_s12, 4294967168  ;;  %s20_s29 = sadd.s32 1, %s1798_s29   ;;  %s2136_s24 = smov %s1782_s25 }
 0x19a   : > { %p17_p3 = scmp.ge.s32.totalorder %s20_s29, 4   ;;  %s2137_s25 = smov %s1786_s26 }
 0x19b   : > { %s2138_s26 = smov %s1897_s14  ;;  %s2139_s27 = smov %s1794_s28 }
 0x19c   : > { %s2140_s28 = smov %s2142_s9  ;;  %19 = sbr.rel (!%p17_p3) target bundleno = 4 (0x4), region = 92 }
 0x1a1   :  { %1401 = vsyncpa [#allocation3], 1 }
 0x1a2   :  { %1403 = vsyncpa [#allocation3 + $0x1], 1 }

</bundles_post_ra>
